<compile_context>
chip_gen: v6e
topology: v6e:2x2x1
jax: 0.10.0
libtpu: 0.0.40
codegen_flags: <defaults>
</compile_context>

<pallas_src>
import functools

import jax
import jax.numpy as jnp
from jax import lax
from jax.experimental import pallas as pl
from jax.experimental.pallas import tpu as pltpu

_NEG_PAD = -1e30                     # padded-feature fill -> sparsemax weight 0
_VMEM_LIMIT = 32 * 1024 * 1024       # explicit, safe on v5e/v6e/v7x


# --------------------------- kernels ---------------------------

def _gbn_stats_kernel(a_ref, w_ref, gb_ref, ss_ref, *, eps):
    """Per-ghost-batch BN statistics folded into an affine (scale, shift) pair."""
    # Linear without bias (bias cancels exactly in training-mode BN).
    y = jnp.dot(a_ref[...], w_ref[...], preferred_element_type=jnp.float32)
    mean = jnp.mean(y, axis=0, keepdims=True)
    diff = y - mean
    var = jnp.mean(diff * diff, axis=0, keepdims=True)
    gb = gb_ref[...]                                   # (2, D): [gamma; beta]
    gamma = gb[0:1, :]
    beta = gb[1:2, :]
    scale = gamma * lax.rsqrt(var + eps)               # gamma folded into rsqrt
    shift = beta - mean * scale
    ss_ref[...] = jnp.concatenate([scale, shift], axis=0)[None, ...]   # (1, 2, D)


def _sparsemax_mask_kernel(a_ref, p_ref, w_ref, ss_ref, o_ref, *, n_iter):
    """Row-tiled: linear + BN-apply + prior mask + sort-free sparsemax."""
    y = jnp.dot(a_ref[...], w_ref[...], preferred_element_type=jnp.float32)
    ss = ss_ref[...]                                   # (1, 2, D)
    scale = ss[:, 0, :]                                # (1, D)
    shift = ss[:, 1, :]
    s = (y * scale + shift) * p_ref[...]               # (rows, D), f32

    # Sparsemax threshold by bisection.  f(tau) = sum(max(s - tau, 0)) is
    # continuous and decreasing, f(max(s)) = 0, f(max(s) - 1) >= 1, so the root
    # tau* lies in [max(s) - 1, max(s)].  No pre-shift needed (shift invariant).
    hi = jnp.max(s, axis=-1, keepdims=True)            # (rows, 1)
    lo = hi - 1.0

    def body(_, carry):
        lo, hi = carry
        tau = 0.5 * (lo + hi)
        f = jnp.sum(jnp.maximum(s - tau, 0.0), axis=-1, keepdims=True)
        go_up = f > 1.0                                # tau too small
        lo = jnp.where(go_up, tau, lo)
        hi = jnp.where(go_up, hi, tau)
        return lo, hi

    lo, hi = lax.fori_loop(0, n_iter, body, (lo, hi), unroll=True)
    tau0 = 0.5 * (lo + hi)

    # One exact refinement: with support S = {i : s_i > tau0} (well separated by
    # the converged bracket), tau = (sum_S s_i - 1) / |S| is the exact threshold.
    sup = (s > tau0).astype(jnp.float32)
    k = jnp.sum(sup, axis=-1, keepdims=True)           # >= 1 always
    csum = jnp.sum(sup * s, axis=-1, keepdims=True)
    tau = (csum - 1.0) / k                             # exact divide (no approx recip)

    o_ref[...] = jnp.maximum(s - tau, 0.0).astype(o_ref.dtype)


# --------------------------- wrapper ---------------------------

def _pick_row_tile(chunk, d_pad):
    budget = 4 * 1024 * 1024   # cap the widest f32 row-tile tensor at ~4 MiB
    for t in (256, 128, 64, 32, 16, 8):
        if chunk % t == 0 and t * d_pad * 4 <= budget:
            return t
    return chunk


def attention_transformer_forward(a, priors, w, b, gamma, beta, *,
                                  relax=1.5, vbs=1024, eps=1e-5,
                                  use_bf16_matmul=False, n_bisect_iter=30):
    """a: (B, d_a); priors: (B, inp_dim); w: (inp_dim, d_a); b/gamma/beta: (inp_dim,)."""
    del relax   # only affects the discarded local priors update in the reference
    del b       # constant per-feature bias cancels exactly in training-mode BN
    B, d_a = a.shape
    inp_dim, d_a_w = w.shape
    assert d_a_w == d_a
    assert priors.shape == (B, inp_dim)

    # Ghost-batch chunking (torch.chunk semantics for evenly divisible B).
    n_chunks = 1 if B <= vbs else B // vbs
    chunk = -(-B // n_chunks)
    # TODO(synk): ragged last ghost batch (B % n_chunks != 0) not supported; the
    # PyTorch GBN reference shrinks the last chunk via torch.chunk.
    assert chunk * n_chunks == B, "B must split evenly into ghost batches"

    # Lane padding so every store is unmasked / lane-dense.
    D = inp_dim
    D_pad = ((D + 127) // 128) * 128
    pad = D_pad - D

    w_t = jnp.asarray(w, jnp.float32).T                      # (d_a, D): one-time tiny transpose
    priors_f = jnp.asarray(priors, jnp.float32)
    gamma_f = jnp.asarray(gamma, jnp.float32).reshape(1, D)
    beta_f = jnp.asarray(beta, jnp.float32).reshape(1, D)
    if pad:
        w_t = jnp.pad(w_t, ((0, 0), (0, pad)))                               # zero weight cols
        priors_f = jnp.pad(priors_f, ((0, 0), (0, pad)), constant_values=1.0)
        gamma_f = jnp.pad(gamma_f, ((0, 0), (0, pad)))                       # scale -> 0
        beta_f = jnp.pad(beta_f, ((0, 0), (0, pad)), constant_values=_NEG_PAD)  # mask -> 0
    gb = jnp.concatenate([gamma_f, beta_f], axis=0)          # (2, D_pad), single small stream

    a_f = jnp.asarray(a, jnp.float32)
    if use_bf16_matmul:      # v6e: halve a/w HBM traffic; BN/sparsemax stay f32
        a_mm, w_mm = a_f.astype(jnp.bfloat16), w_t.astype(jnp.bfloat16)
    else:
        a_mm, w_mm = a_f, w_t

    cparams = pltpu.CompilerParams(dimension_semantics=("parallel",),
                                   vmem_limit_bytes=_VMEM_LIMIT)

    # ---- Phase 1: per-ghost-batch BN (scale, shift). Grid over chunks. ----
    ss = pl.pallas_call(
        functools.partial(_gbn_stats_kernel, eps=eps),
        out_shape=jax.ShapeDtypeStruct((n_chunks, 2, D_pad), jnp.float32),
        grid=(n_chunks,),
        in_specs=[
            pl.BlockSpec((chunk, d_a), lambda i: (i, 0)),      # a chunk
            pl.BlockSpec((d_a, D_pad), lambda i: (0, 0)),      # weight (pre-transposed)
            pl.BlockSpec((2, D_pad), lambda i: (0, 0)),        # [gamma; beta]
        ],
        out_specs=pl.BlockSpec((1, 2, D_pad), lambda i: (i, 0, 0)),
        compiler_params=cparams,
    )(a_mm, w_mm, gb)

    # ---- Phase 2: row-tiled linear + BN-apply + sparsemax. Parallel grid. ----
    row_tile = _pick_row_tile(chunk, D_pad)
    tiles_per_chunk = chunk // row_tile
    n_tiles = B // row_tile

    out = pl.pallas_call(
        functools.partial(_sparsemax_mask_kernel, n_iter=n_bisect_iter),
        out_shape=jax.ShapeDtypeStruct((B, D_pad), jnp.float32),
        grid=(n_tiles,),
        in_specs=[
            pl.BlockSpec((row_tile, d_a), lambda i: (i, 0)),               # a rows
            pl.BlockSpec((row_tile, D_pad), lambda i: (i, 0)),             # priors rows
            pl.BlockSpec((d_a, D_pad), lambda i: (0, 0)),                  # weight
            pl.BlockSpec((1, 2, D_pad),
                         lambda i: (i // tiles_per_chunk, 0, 0)),          # chunk's (scale, shift)
        ],
        out_specs=pl.BlockSpec((row_tile, D_pad), lambda i: (i, 0)),
        compiler_params=cparams,
    )(a_mm, priors_f, w_mm, ss)

    return out[:, :D] if pad else out


# ------------------------- pure-JAX reference -------------------------

def _sparsemax_ref(z):
    z = z - jnp.max(z, axis=-1, keepdims=True)
    z_srt = -jnp.sort(-z, axis=-1)
    cumsum = jnp.cumsum(z_srt, axis=-1) - 1.0
    d = z.shape[-1]
    rhos = jnp.arange(1, d + 1, dtype=z.dtype)
    support = rhos * z_srt > cumsum
    k = jnp.sum(support, axis=-1, keepdims=True)
    tau = jnp.take_along_axis(cumsum, k.astype(jnp.int32) - 1, axis=-1)
    tau = tau / k.astype(z.dtype)
    return jnp.maximum(z - tau, 0.0)


def attention_transformer_reference(a, priors, w, b, gamma, beta, *,
                                    vbs=1024, eps=1e-5):
    B = a.shape[0]
    y = a @ w.T + b                       # keeps the bias: cross-checks that it cancels
    n_chunks = 1 if B <= vbs else B // vbs
    outs = []
    for yc, pc in zip(jnp.split(y, n_chunks, axis=0),
                      jnp.split(priors, n_chunks, axis=0)):
        mean = jnp.mean(yc, axis=0, keepdims=True)
        var = jnp.mean((yc - mean) ** 2, axis=0, keepdims=True)
        zc = (yc - mean) * jax.lax.rsqrt(var + eps) * gamma + beta
        outs.append(_sparsemax_ref(zc * pc))
    return jnp.concatenate(outs, axis=0)


# ------------------------------- test -------------------------------

def _run_case(key, B, d_a, inp_dim, vbs):
    ka, kp, kw, kb, kg, kbe = jax.random.split(key, 6)
    a = jax.random.normal(ka, (B, d_a), dtype=jnp.float32)
    priors = jax.random.uniform(kp, (B, inp_dim), dtype=jnp.float32,
                                minval=0.5, maxval=1.0)
    w = jax.random.normal(kw, (inp_dim, d_a), dtype=jnp.float32) * 0.1
    b = jax.random.normal(kb, (inp_dim,), dtype=jnp.float32) * 0.01
    gamma = 1.0 + 0.1 * jax.random.normal(kg, (inp_dim,), dtype=jnp.float32)
    beta = 0.1 * jax.random.normal(kbe, (inp_dim,), dtype=jnp.float32)

    mask = attention_transformer_forward(a, priors, w, b, gamma, beta,
                                         relax=1.5, vbs=vbs)
    mask = jax.block_until_ready(mask)

    ref = attention_transformer_reference(a, priors, w, b, gamma, beta, vbs=vbs)
    assert mask.shape == (B, inp_dim)
    assert jnp.allclose(jnp.sum(mask, axis=-1), 1.0, atol=1e-4), "rows must sum to 1"
    assert jnp.allclose(mask, ref, atol=2e-4, rtol=2e-4), "mismatch vs reference"


if __name__ == "__main__":
    key = jax.random.PRNGKey(0)
    k1, k2 = jax.random.split(key)

    # Case 1: two ghost batches (B > vbs), lane-dense inp_dim = 128.
    _run_case(k1, B=16, d_a=32, inp_dim=128, vbs=8)

    # Case 2: single ghost batch, non-128-aligned inp_dim -> exercises lane padding.
    _run_case(k2, B=8, d_a=16, inp_dim=40, vbs=1024)

    print("KERNEL_OK")
</pallas_src>

<mosaic_0001>
module attributes {stable_mosaic.version = 11 : i64} {
  func.func @_gbn_stats_kernel(%arg0: i32, %arg1: memref<8x32xf32, #tpu.memory_space<vmem>>, %arg2: memref<32x128xf32, #tpu.memory_space<vmem>>, %arg3: memref<2x128xf32, #tpu.memory_space<vmem>>, %arg4: memref<1x2x128xf32, #tpu.memory_space<vmem>>) attributes {dimension_semantics = [#tpu.dimension_semantics<parallel>], iteration_bounds = array<i64: 2>, scalar_prefetch = 0 : i64, scratch_operands = 0 : i64, tpu.core_type = #tpu.core_type<tc>, window_params = [{transform_indices = @transform_0, window_bounds = array<i64: 8, 32>}, {pipeline_mode = #tpu.pipeline_mode<synchronous>, transform_indices = @transform_1, window_bounds = array<i64: 32, 128>}, {pipeline_mode = #tpu.pipeline_mode<synchronous>, transform_indices = @transform_2, window_bounds = array<i64: 2, 128>}, {transform_indices = @transform_3, window_bounds = array<i64: 1, 2, 128>}]} {
    %c0 = arith.constant 0 : index
    %c0_0 = arith.constant 0 : index
    %0 = vector.load %arg1[%c0, %c0_0] : memref<8x32xf32, #tpu.memory_space<vmem>>, vector<8x32xf32>
    %c0_1 = arith.constant 0 : index
    %c0_2 = arith.constant 0 : index
    %1 = vector.load %arg2[%c0_1, %c0_2] : memref<32x128xf32, #tpu.memory_space<vmem>>, vector<32x128xf32>
    %cst = arith.constant dense<0.000000e+00> : vector<8x128xf32>
    %2 = tpu.matmul %0, %1, %cst {dimension_numbers = #tpu.dot_dimension_numbers<[1], [0], [0], [1], [0, 0, 1, 1], [], []>} : vector<8x32xf32>, vector<32x128xf32>, vector<8x128xf32> -> vector<8x128xf32>
    %cst_3 = arith.constant dense<0.000000e+00> : vector<128xf32>
    %3 = vector.multi_reduction <add>, %2, %cst_3 [0] : vector<8x128xf32> to vector<128xf32>
    %4 = vector.shape_cast %3 : vector<128xf32> to vector<1x128xf32>
    %cst_4 = arith.constant 8.000000e+00 : f32
    %5 = vector.broadcast %cst_4 : f32 to vector<1x128xf32>
    %6 = arith.divf %4, %5 : vector<1x128xf32>
    %7 = vector.broadcast %6 : vector<1x128xf32> to vector<8x128xf32>
    %8 = arith.subf %2, %7 : vector<8x128xf32>
    %9 = arith.mulf %8, %8 : vector<8x128xf32>
    %cst_5 = arith.constant dense<0.000000e+00> : vector<128xf32>
    %10 = vector.multi_reduction <add>, %9, %cst_5 [0] : vector<8x128xf32> to vector<128xf32>
    %11 = vector.shape_cast %10 : vector<128xf32> to vector<1x128xf32>
    %cst_6 = arith.constant 8.000000e+00 : f32
    %12 = vector.broadcast %cst_6 : f32 to vector<1x128xf32>
    %13 = arith.divf %11, %12 : vector<1x128xf32>
    %c0_7 = arith.constant 0 : index
    %c0_8 = arith.constant 0 : index
    %14 = vector.load %arg3[%c0_7, %c0_8] : memref<2x128xf32, #tpu.memory_space<vmem>>, vector<2x128xf32>
    %15 = vector.extract_strided_slice %14 {offsets = [0, 0], sizes = [1, 128], strides = [1, 1]} : vector<2x128xf32> to vector<1x128xf32>
    %16 = vector.extract_strided_slice %14 {offsets = [1, 0], sizes = [1, 128], strides = [1, 1]} : vector<2x128xf32> to vector<1x128xf32>
    %cst_9 = arith.constant 9.99999974E-6 : f32
    %17 = vector.broadcast %cst_9 : f32 to vector<1x128xf32>
    %18 = arith.addf %13, %17 : vector<1x128xf32>
    %19 = math.rsqrt %18 : vector<1x128xf32>
    %20 = arith.mulf %15, %19 : vector<1x128xf32>
    %21 = arith.mulf %6, %20 : vector<1x128xf32>
    %22 = arith.subf %16, %21 : vector<1x128xf32>
    %23 = tpu.concatenate %20, %22 in 0 : vector<1x128xf32>, vector<1x128xf32> -> vector<2x128xf32>
    %24 = vector.shape_cast %23 : vector<2x128xf32> to vector<1x2x128xf32>
    %c0_10 = arith.constant 0 : index
    %c0_11 = arith.constant 0 : index
    %c0_12 = arith.constant 0 : index
    %25 = vector.load %arg4[%c0_10, %c0_11, %c0_12] : memref<1x2x128xf32, #tpu.memory_space<vmem>>, vector<1x2x128xf32>
    tpu.vector_store %arg4[%c0_10, %c0_11, %c0_12], %24 {strides = array<i32>} : memref<1x2x128xf32, #tpu.memory_space<vmem>>, vector<1x2x128xf32>,
    return
  }
  func.func @transform_0(%arg0: i32) -> (i32, i32) {
    %c0_i32 = arith.constant 0 : i32
    %c0_i32_0 = arith.constant 0 : i32
    return %arg0, %c0_i32 : i32, i32
  }
  func.func @transform_1(%arg0: i32) -> (i32, i32) {
    %c0_i32 = arith.constant 0 : i32
    %c0_i32_0 = arith.constant 0 : i32
    %c0_i32_1 = arith.constant 0 : i32
    return %c0_i32, %c0_i32_0 : i32, i32
  }
  func.func @transform_2(%arg0: i32) -> (i32, i32) {
    %c0_i32 = arith.constant 0 : i32
    %c0_i32_0 = arith.constant 0 : i32
    %c0_i32_1 = arith.constant 0 : i32
    return %c0_i32, %c0_i32_0 : i32, i32
  }
  func.func @transform_3(%arg0: i32) -> (i32, i32, i32) {
    %c0_i32 = arith.constant 0 : i32
    %c0_i32_0 = arith.constant 0 : i32
    %c0_i32_1 = arith.constant 0 : i32
    return %arg0, %c0_i32, %c0_i32_0 : i32, i32, i32
  }
}

</mosaic_0001>

<bundles_post_ra>
// kernel: tpu_custom_call.1
= control target key start
LH: loop header
LB: loop body
LE: loop exit
PB: predicated region body
PF: predicated region fallthrough
CT: control target
= control target key end

     0   :  { %8 = vsyncpa [#allocation3], 0  ;;  %s812_s0 = inlined_call_operand.hbm [shape: f32[16,32], index: 0, kind: input, shape index: {}]   ;;  %s813_s1 = inlined_call_operand.hbm [shape: f32[32,128], index: 1, kind: input, shape index: {}]   ;;  %s814_s2 = inlined_call_operand.vmem [shape: f32[2,128], index: 2, kind: input, shape index: {}]   ;;  %s815_s3 = inlined_call_operand.hbm [shape: f32[2,2,128], index: 3, kind: output, shape index: {}]  }
   0x1   :  { %10 = vsyncpa [#allocation3 + $0x1], 0 }
   0x2   :  { %11 = vsyncpa [#allocation6], 0 }
   0x3   :  { %12 = vsyncpa [#allocation4], 0 }
   0x4   :  { %14 = vsyncpa [#allocation4 + $0x1], 0  ;;  %s648_s12 = smov 0   ;;  %s650_s13 = smov 0  }
   0x5   :  { %s652_s14 = smov 0   ;;  %s654_s15 = smov 0  }
   0x6 LB: > { %s669_s16 = sadd.s32 4294967295, %s619_s15   ;;  %s403_s17 = sadd.s32 4294967294, %s619_s15   ;;  %s619_s15 = sphi %s654_s15, %s837_s15   ;;  %s615_s14 = sphi %s652_s14, %s836_s14   ;;  %s611_s13 = sphi %s650_s13, %s835_s13   ;;  %s607_s12 = sphi %s648_s12, %s834_s12  }
   0x7   : > { %p40_p0 = scmp.ne.s32.totalorder %s611_s13, %s607_s12  ;;  %p816_p1 = scmp.eq.s32.totalorder %s669_s16, 0 }
   0x8   : > { %p112_p3 = scmp.eq.s32.totalorder %s403_s17, 1  ;;  %p404_p5 = scmp.ge.s32.totalorder %s619_s15, 1 }
   0x9   : > { %p678_p4 = por %p816_p1, %p40_p0  ;;  %p119_p7 = scmp.lt.s32.totalorder %s619_s15, 3 }
   0xa   : > { %p683_p6 = por %p112_p3, %p40_p0  ;;  %s621_s21 = smov [#allocation5]  }
   0xb   : > { %s820_s18 = scalar_select %p678_p4, 1, 0 }
   0xc   : > { %s821_s19 = scalar_select %p683_p6, 1, 0 }
   0xd   : > { %p688_p8 = pnand %p404_p5, %p119_p7  ;;  %s131_s22 = sshll.u32 %s621_s21, 4  ;;  %s132_s22 = int_to_ptr.vmem [resolvable:$true] %s131_s22 }
   0xe   : > { %s702_s24 = sadd.s32 1, %s619_s15   ;;  %s27_s25 = sadd.s32 1, %s615_s14 }
   0xf   : > { %s822_s20 = scalar_select %p688_p8, 1, 0 }
  0x10   : > { %p442_p9 = pneg %p688_p8  ;;  %s24_s26 = ssub.s32 %s619_s15, %s702_s24 }
  0x11   : > { %s508_s27 = scalar_lea.vmem %s132_s22, 512  ;;  %p516_p5 = scmp.lt.s32.totalorder %s132_s22, %s132_s22 }
  0x12   : > { %p697_p11 = pnand %p442_p9, %p816_p1  ;;  %p509_p13 = scmp.ne.s32.totalorder %s132_s22, %s508_s27 }
  0x13   : > { %p517_p7 = scmp.lt.s32.totalorder %s508_s27, %s508_s27 }
  0x14   : > { %p499_p12 = pneg %p697_p11 }
  0x15   : > { %p518_p10 = por %p517_p7, %p516_p5 }
  0x16   : > { %p511_p0 = pnand %p509_p13, %p499_p12 }
  0x18   : > { %p512_p3 = pneg %p511_p0 }
  0x1a   : > { %p519_p2 = pnand %p518_p10, %p512_p3 }
  0x1c   : > { %522 = shalt.err (!%p519_p2)
}
  0x1d   : > { %s622_s28 = smov 128   ;;  %s623_s29 = smov 8  }
  0x1e   : > { %445 = dma.hbm_to_vmem [thread:$0]  (!%p697_p11), %s813_s1, 512, %s132_s22, [#allocation6], %s622_s28, %s622_s28, %s623_s29  }
  0x1f   : > { %p25_p9 = scmp.eq.s32.totalorder %s24_s26, 0  ;;  %p34_p12 = scmp.ne.s32.totalorder %s615_s14, %s611_s13 }
  0x20   : > { %p35_p10 = scmp.eq.s32.totalorder %s619_s15, 0  ;;  %p455_p2 = scmp.lt.s32.totalorder %s619_s15, 2 }
  0x21   : > { %s719_s5 = scalar_select %p25_p9, %s615_s14, %s27_s25  }
  0x22   : > { %p36_p13 = por %p35_p10, %p34_p12  ;;  %p824_p0 = scmp.eq.s32.totalorder %s669_s16, 1 }
  0x23   : > { %s148_s7 = sand.u32 1, %s615_s14   ;;  %s408_s8 = sshll.u32 %s619_s15, 7 }
  0x24   : > { %p723_p3 = por %p824_p0, %p34_p12  ;;  %s407_s9 = sshll.u32 %s148_s7, 3 }
  0x25   : > { %s732_s17 = scalar_lea.hbm %s812_s0, %s408_s8  ;;  %s152_s21 = scalar_lea.vmem [#allocation2], %s407_s9 }
  0x26   : > { %s825_s6 = scalar_select %p723_p3, 1, 0 }
  0x27   : > { %s159_s22 = sshll.u32 %s152_s21, 4  ;;  %p734_p11 = pnand %p455_p2, %p36_p13  ;;  %s160_s22 = int_to_ptr.vmem [resolvable:$true] %s159_s22 }
  0x28   : > { %s149_s25 = scalar_lea.sflag [#allocation3], %s148_s7  ;;  %s523_s26 = scalar_lea.hbm %s732_s17, 128 }
  0x29   : > { %p524_p5 = scmp.ne.s32.totalorder %s732_s17, %s523_s26  ;;  %p525_p7 = pneg %p734_p11 }
  0x2a   : > { %s528_s29 = scalar_lea.hbm %s812_s0, 256  ;;  %p529_p10 = scmp.lt.s32.totalorder %s732_s17, %s812_s0 }
  0x2b   : > { %p526_p9 = pnand %p525_p7, %p524_p5  ;;  %p530_p2 = scmp.lt.s32.totalorder %s528_s29, %s523_s26 }
  0x2d   : > { %p527_p12 = pneg %p526_p9  ;;  %p531_p13 = por %p530_p2, %p529_p10 }
  0x2f   : > { %p532_p0 = pnand %p531_p13, %p527_p12 }
  0x31   : > { %535 = shalt.err (!%p532_p0)
}
  0x32   : > { %s536_s8 = scalar_lea.vmem %s160_s22, 128  ;;  %s624_s7 = smov [#allocation2]  }
  0x33   : > { %p537_p1 = scmp.ne.s32.totalorder %s160_s22, %s536_s8  ;;  %s541_s9 = sshll.u32 %s624_s7, 4  ;;  %s542_s9 = int_to_ptr.vmem [resolvable:$false] %s541_s9 }
  0x34   : > { %s543_s10 = scalar_lea.vmem %s542_s9, 256  ;;  %p544_p5 = scmp.lt.s32.totalorder %s160_s22, %s542_s9 }
  0x35   : > { %p539_p6 = pnand %p537_p1, %p525_p7  ;;  %p545_p9 = scmp.lt.s32.totalorder %s543_s10, %s536_s8 }
  0x37   : > { %p540_p3 = pneg %p539_p6  ;;  %p546_p4 = por %p545_p9, %p544_p5 }
  0x39   : > { %p547_p8 = pnand %p546_p4, %p540_p3 }
  0x3b   : > { %550 = shalt.err (!%p547_p8)
}
  0x3c   : > { %449 = dma.hbm_to_vmem [thread:$0]  (!%p734_p11), %s732_s17, 128, %s160_s22, %s149_s25  }
  0x3d   : > { %p827_p12 = scmp.ne.s32.totalorder %s822_s20, 0 }
  0x3e   : > { %s755_s11 = sand.u32 (!%p827_p12), 1, %s611_s13   ;;  %p828_p1 = scmp.ne.s32.totalorder (!%p827_p12), %s820_s18, 0 }
  0x3f   : > { %168 = sbr.rel (%p827_p12) target bundleno = 344 (0x158), region = 32  ;;  %s410_s21 = sshll.u32 (!%p827_p12), %s755_s11, 3 }
  0x40   : > { %s171_s26 = scalar_lea.sflag (!%p827_p12), [#allocation3], %s755_s11  ;;  %s174_s27 = scalar_lea.vmem (!%p827_p12), [#allocation2], %s410_s21 }
  0x44   : > { %594 = dma.done.wait (%p828_p1), %s171_s26, 128  }
  0x45   : > { %596 = vsyncadd (%p828_p1), %s171_s26, 4294967168  ;;  %p829_p4 = scmp.eq.s32.totalorder %s669_s16, 0 }
  0x47   : > { %598 = dma.done.wait (%p829_p4), [#allocation6], 512   ;;  %p830_p6 = pmov %p829_p4 }
  0x48   : > { %v625_v0 = vmov 0.0   ;;  %vm626_vm0 = vmmov 0   ;;  %v205_v1 = vld [vmem:[#allocation5 + $0x18] sm:$0xff]  ;;  %v204_v2 = vld [vmem:[#allocation5 + $0x10] sm:$0xff]  ;;  %v203_v3 = vld [vmem:[#allocation5 + $0x8] sm:$0xff]  ;;  %vm206_vm1 = vcmask 261120  }
  0x49   : > { %600 = vsyncadd (%p830_p6), [#allocation6], 4294966784  ;;  %423 = vmatprep.subr.mxu0 %v625_v0  ;;  %431 = vmatprep.mubr.msk.f32.mxu0 %vm626_vm0, %v625_v0  ;;  %v202_v4 = vld [vmem:[#allocation5] sm:$0xff]  ;;  %v201_v5 = vld [vmem:[%s174_s27] sm:$0xff]  ;;  %s412_s17 = sshll.u32 %s755_s11, 1  ;;  %s415_s22 = sshll.u32 %s669_s16, 5 }
  0x4a   : > { %424 = vmatpush3.msra.mxu0 %v205_v1  ;;  %v297_v25 = vld [vmem:[%s814_s2] sm:$0x3]  ;;  %s200_s23 = scalar_lea.vmem [#allocation7], %s412_s17  ;;  %vm306_vm2 = vcmask 1040384   ;;  %s775_s30 = scalar_lea.hbm %s815_s3, %s415_s22 }
  0x4b   : > { %425 = vmatprep.subr.mxu0 %v625_v0  ;;  %s323_s25 = sshll.u32 %s200_s23, 4  ;;  %s310_s4 = scalar_lea.sflag [#allocation4], %s755_s11  ;;  %s324_s25 = int_to_ptr.vmem [resolvable:$true] %s323_s25 }
  0x4c   : > { %426 = vmatpush3.msra.mxu0 %v204_v2  ;;  %s551_s8 = scalar_lea.vmem %s324_s25, 32  ;;  %p831_p3 = scmp.ne.s32.totalorder %s825_s6, 0 }
  0x4d   : > { %427 = vmatprep.subr.mxu0 %v625_v0  ;;  %p552_p8 = scmp.ne.s32.totalorder %s324_s25, %s551_s8  ;;  %s627_s7 = smov [#allocation7]  }
  0x4e   : > { %428 = vmatpush3.msra.mxu0 %v203_v3  ;;  %s555_s16 = sshll.u32 %s627_s7, 4  ;;  %s556_s16 = int_to_ptr.vmem [resolvable:$false] %s555_s16 }
  0x4f   : > { %429 = vmatprep.subr.mxu0 %v625_v0  ;;  %p553_p11 = pnand %p552_p8, %p831_p3  ;;  %s557_s9 = scalar_lea.vmem %s556_s16, 64 }
  0x50   : > { %430 = vmatpush3.msra.mxu0 %v202_v4  ;;  %p558_p10 = scmp.lt.s32.totalorder %s324_s25, %s556_s16  ;;  %p559_p2 = scmp.lt.s32.totalorder %s557_s9, %s551_s8 }
  0x51   : > { %432 = vmatmul.mubr.msk.f32.vlgmr.msra.gmra.mxu0 %vm206_vm1, %v201_v5  ;;  %p554_p7 = pneg %p553_p11 }
  0x52   : > { %p560_p13 = por %p559_p2, %p558_p10 }
  0x54   : > { %p561_p0 = pnand %p560_p13, %p554_p7 }
 0x111   : > { %v276_v6 = vpop.f32.mrf.mxu0 }
 0x112   : > { %v280_v7 = vrot.slane %v276_v6, 4 }
 0x113   : > { %v433_v8 = vpop.f32.mrf.mxu0 }
 0x114   : > { %v281_v9 = vadd.f32 %v280_v7, %v276_v6 }
 0x116   : > { %v282_v10 = vrot.slane %v281_v9, 2 }
 0x118   : > { %v283_v11 = vadd.f32 %v282_v10, %v281_v9 }
 0x11a   : > { %v284_v12 = vrot.slane %v283_v11, 1 }
 0x11c   : > { %v285_v13 = vadd.f32 %v284_v12, %v283_v11 }
 0x11e   : > { %v287_v14 = vmul.f32 0.125, %v285_v13 }
 0x120   : > { %v288_v15 = vsub.f32 %v276_v6, %v287_v14 }
 0x122   : > { %v289_v16 = vmul.f32 %v288_v15, %v288_v15 }
 0x124   : > { %v290_v17 = vrot.slane %v289_v16, 4 }
 0x126   : > { %v291_v18 = vadd.f32 %v290_v17, %v289_v16 }
 0x128   : > { %v292_v19 = vrot.slane %v291_v18, 2 }
 0x12a   : > { %v293_v20 = vadd.f32 %v292_v19, %v291_v18 }
 0x12c   : > { %v294_v21 = vrot.slane %v293_v20, 1 }
 0x12e   : > { %v295_v22 = vadd.f32 %v294_v21, %v293_v20 }
 0x130   : > { %v296_v23 = vmul.f32 0.125, %v295_v22 }
 0x132   : > { %v298_v24 = vadd.f32 1e-05, %v296_v23 }
 0x134   : > { %495 = vrsqrt.f32 %v298_v24 }
 0x141   : > { %v496_v26 = vpop.eup %495 }
 0x142   : > { %v300_v27 = vmul.f32 %v496_v26, %v297_v25 }
 0x144   : > { %v301_v28 = vmul.f32 %v300_v27, %v287_v14 }
 0x146   : > { %v303_v29 = vrot.slane %v301_v28, 7 }
 0x148   : > { %v305_v30 = vsub.f32 %v297_v25, %v303_v29 }
 0x14a   : > { %v307_v31 = vsel %vm306_vm2, %v300_v27, %v305_v30 }
 0x14b   : > { %308 = vst [vmem:[%s200_s23] sm:$0x3] %v307_v31 }
 0x14c   : > { %564 = shalt.err (!%p561_p0)
}
 0x14d   : > { %s565_s10 = scalar_lea.hbm %s775_s30, 32  ;;  %s569_s26 = scalar_lea.hbm %s815_s3, 64 }
 0x14e   : > { %p566_p5 = scmp.ne.s32.totalorder %s775_s30, %s565_s10  ;;  %p570_p1 = scmp.lt.s32.totalorder %s775_s30, %s815_s3 }
 0x14f   : > { %p571_p4 = scmp.lt.s32.totalorder %s569_s26, %s565_s10 }
 0x150   : > { %p567_p9 = pnand %p566_p5, %p831_p3 }
 0x151   : > { %p572_p6 = por %p571_p4, %p570_p1 }
 0x152   : > { %p568_p12 = pneg %p567_p9 }
 0x154   : > { %p573_p8 = pnand %p572_p6, %p568_p12 }
 0x156   : > { %576 = shalt.err (!%p573_p8)
}
 0x157   : > { %440 = dma.vmem_to_hbm [thread:$0]  (%p831_p3), %s324_s25, 32, %s775_s30, %s310_s4  }
 0x158 PF: > { %s335_s20 = sand.u32 1, %s607_s12   ;;  %p832_p11 = scmp.ne.s32.totalorder %s821_s19, 0 }
 0x159   : > { %p833_p7 = scmp.ge.s32.totalorder %s619_s15, 2  ;;  %s336_s17 = scalar_lea.sflag [#allocation4], %s335_s20 }
 0x15b   : > { %p451_p10 = pnand %p833_p7, %p832_p11 }
 0x15d   : > { %p452_p2 = pneg %p451_p10 }
 0x15f   : > { %602 = dma.done.wait (%p452_p2), %s336_s17, 32  }
 0x160   : > { %604 = vsyncadd (%p452_p2), %s336_s17, 4294967264  ;;  %p17_p13 = scmp.ge.s32.totalorder %s702_s24, 4   ;;  %s834_s12 = smov %s611_s13 }
 0x161   : > { %s835_s13 = smov %s615_s14  ;;  %s836_s14 = smov %s719_s5 }
 0x162   : > { %s837_s15 = smov %s702_s24  ;;  %19 = sbr.rel (!%p17_p13) target bundleno = 6 (0x6), region = 81 }
 0x167   :  { %341 = vsyncpa [#allocation3], 1 }
 0x168   :  { %343 = vsyncpa [#allocation3 + $0x1], 1 }
 0x169   :  { %344 = vsyncpa [#allocation6], 1 }
 0x16a   :  { %345 = vsyncpa [#allocation4], 1 }
 0x16b   :  { %347 = vsyncpa [#allocation4 + $0x1], 1 }

</bundles_post_ra>
